<compile_context>
chip_gen: v5e
topology: v5e:2x2
jax: 0.10.0
libtpu: 0.0.40
codegen_flags: <defaults>
</compile_context>

<pallas_src>
import jax
import jax.numpy as jnp
from jax.experimental import pallas as pl
from jax.experimental.pallas import tpu as pltpu

B, F = 3, 4   # fixed by the module: h, y = zeros(3, 4); Linear(4, 4)


def _rnn_loop_kernel(w_ref, b_ref, x_ref, h_ref):
    """One grid step == one full sequence.

    w_ref: (F*F,) SMEM  Linear weight, PyTorch (out, in) layout, flattened 1-D.
    b_ref: (F,)   SMEM  Linear bias.
    x_ref: (T, B, F) VMEM  this sequence's inputs (leading batch dim squeezed).
    h_ref: (B, F) VMEM  output: final hidden state (== y).
    """
    T = x_ref.shape[0]
    x = x_ref[...]                                   # (T, B, F)

    # Lane index along the feature (output) axis; built once, reused for all
    # parameter rows (hoisted -- JAX does not CSE broadcasts inside loops).
    lane = jax.lax.broadcasted_iota(jnp.int32, (1, 1, F), 2)

    def lane_vec(scalars):
        """Assemble a (1, 1, F) lane-varying row from F SMEM scalars (VPU selects)."""
        row = jnp.zeros((1, 1, F), jnp.float32)
        for o, s in enumerate(scalars):
            row = jnp.where(lane == o, s, row)
        return row

    # ---- hoisted Linear over ALL timesteps (off the serial path) -----------
    # lin[t, b, o] = sum_f x[t, b, f] * W[o, f] + bias[o].
    # K = F = 4 is far too small for the MXU: 4 broadcast FMAs on the VPU over
    # the whole (T, B) slab, with scalar parameters sourced from SMEM.
    bias_row = lane_vec([b_ref[o] for o in range(F)])
    lin = jnp.broadcast_to(bias_row, x.shape)        # one-time broadcast
    for f in range(F):                               # static unroll, F = 4
        w_row = lane_vec([w_ref[o * F + f] for o in range(F)])   # W[o, f] over lanes o
        lin = lin + x[:, :, f:f + 1] * w_row

    # ---- hoisted decision gate: one sign per timestep -----------------------
    s = jnp.sum(lin, axis=2, keepdims=True)          # lane reduce    -> (T, B, 1)
    s = jnp.sum(s, axis=1, keepdims=True)            # sublane reduce -> (T, 1, 1)
    sign = jnp.where(s > 0.0, jnp.float32(1.0), jnp.float32(-1.0))
    gated = lin * sign                               # register value, NOT scratch

    # ---- serial recurrence: only a VPU add + EUP tanh per step --------------
    # Static unroll over the register-resident gated slab: no per-step VMEM
    # round-trip on the only critical path in this kernel.
    h = jnp.zeros((B, F), jnp.float32)
    for t in range(T):
        h = jnp.tanh(gated[t] + h)

    h_ref[...] = h


def my_rnn_loop_batched(xs_batch, weight, bias):
    """xs_batch: (N, T, 3, 4). Returns h of shape (N, 3, 4) (== y per sequence).

    grid=(N,) with dimension_semantics=("parallel",): independent sequences are
    megacore-sharded across v7x's two TensorCores (no-op on single-TC v5e/v6e),
    and their whole-sequence DMAs pipeline across grid steps.
    """
    N, T = xs_batch.shape[0], xs_batch.shape[1]
    w_flat = weight.astype(jnp.float32).reshape(F * F)   # (out, in) row-major
    b_vec = bias.astype(jnp.float32).reshape(F)

    return pl.pallas_call(
        _rnn_loop_kernel,
        out_shape=jax.ShapeDtypeStruct((N, B, F), jnp.float32),
        grid_spec=pltpu.PrefetchScalarGridSpec(
            num_scalar_prefetch=0,
            grid=(N,),
            in_specs=[
                pl.BlockSpec(memory_space=pltpu.MemorySpace.SMEM),   # W (flat, 1-D)
                pl.BlockSpec(memory_space=pltpu.MemorySpace.SMEM),   # bias
                pl.BlockSpec((None, T, B, F), lambda n: (n, 0, 0, 0)),  # one sequence
            ],
            out_specs=pl.BlockSpec((None, B, F), lambda n: (n, 0, 0)),  # final h
        ),
        compiler_params=pltpu.CompilerParams(
            dimension_semantics=("parallel",),
        ),
    )(w_flat, b_vec, xs_batch.astype(jnp.float32))


def my_rnn_loop(xs, weight, bias):
    """Module-faithful API. xs: (T, 3, 4); weight: (4, 4) PyTorch (out, in);
    bias: (4,). Returns (y, h), each (3, 4); y == h by construction."""
    h = my_rnn_loop_batched(xs[None], weight, bias)[0]
    return h, h


def my_rnn_loop_ref(xs, weight, bias):
    """Pure-JAX reference mirroring the PyTorch forward exactly."""
    h = jnp.zeros((B, F), jnp.float32)
    y = jnp.zeros((B, F), jnp.float32)
    for i in range(xs.shape[0]):
        lin = jnp.dot(xs[i], weight.T, precision=jax.lax.Precision.HIGHEST) + bias
        gated = jnp.where(jnp.sum(lin) > 0.0, lin, -lin)
        h = jnp.tanh(gated + h)
        y = h
    return y, h


if __name__ == "__main__":
    key = jax.random.PRNGKey(0)
    k_x, k_w, k_b, k_x2, k_xb = jax.random.split(key, 5)

    # Deterministic synthetic Linear(4, 4) parameters (PyTorch layout: (out, in)).
    weight = jax.random.normal(k_w, (F, F), dtype=jnp.float32) * 0.5
    bias = jax.random.normal(k_b, (F,), dtype=jnp.float32) * 0.1

    # --- single sequence, T = 8 (module-faithful path) ---------------------
    T = 8
    xs = jax.random.normal(k_x, (T, B, F), dtype=jnp.float32)
    y, h = my_rnn_loop(xs, weight, bias)
    jax.block_until_ready((y, h))
    y_exp, h_exp = my_rnn_loop_ref(xs, weight, bias)
    assert jnp.allclose(y, y_exp, atol=1e-5, rtol=1e-5), "y mismatch vs reference (T=8)"
    assert jnp.allclose(h, h_exp, atol=1e-5, rtol=1e-5), "h mismatch vs reference (T=8)"

    # --- single sequence, different T exercises static re-specialization ----
    T2 = 5
    xs2 = jax.random.normal(k_x2, (T2, B, F), dtype=jnp.float32)
    y2, h2 = my_rnn_loop(xs2, weight, bias)
    jax.block_until_ready((y2, h2))
    y2_exp, h2_exp = my_rnn_loop_ref(xs2, weight, bias)
    assert jnp.allclose(y2, y2_exp, atol=1e-5, rtol=1e-5), "y mismatch vs reference (T=5)"
    assert jnp.allclose(h2, h2_exp, atol=1e-5, rtol=1e-5), "h mismatch vs reference (T=5)"

    # --- batched path: N sequences per pallas_call (amortizes launch overhead,
    #     megacore-parallel across v7x's two TensorCores) ---------------------
    N = 4
    xs_b = jax.random.normal(k_xb, (N, T, B, F), dtype=jnp.float32)
    h_b = my_rnn_loop_batched(xs_b, weight, bias)
    jax.block_until_ready(h_b)
    for n in range(N):
        _, hn_exp = my_rnn_loop_ref(xs_b[n], weight, bias)
        assert jnp.allclose(h_b[n], hn_exp, atol=1e-5, rtol=1e-5), f"h mismatch (batched seq {n})"

    print("KERNEL_OK")
</pallas_src>

<mosaic_0001>
module attributes {stable_mosaic.version = 11 : i64} {
  func.func @_rnn_loop_kernel(%arg0: i32, %arg1: memref<16xf32, #tpu.memory_space<smem>>, %arg2: memref<4xf32, #tpu.memory_space<smem>>, %arg3: memref<1x8x3x4xf32, #tpu.memory_space<vmem>>, %arg4: memref<1x3x4xf32, #tpu.memory_space<vmem>>) attributes {dimension_semantics = [#tpu.dimension_semantics<parallel>], iteration_bounds = array<i64: 1>, scalar_prefetch = 0 : i64, scratch_operands = 0 : i64, tpu.core_type = #tpu.core_type<tc>, window_params = [{transform_indices = @transform_0, window_bounds = array<i64: 16>}, {transform_indices = @transform_1, window_bounds = array<i64: 4>}, {transform_indices = @transform_2, window_bounds = array<i64: 1, 8, 3, 4>}, {transform_indices = @transform_3, window_bounds = array<i64: 1, 3, 4>}]} {
    %c0 = arith.constant 0 : index
    %c0_0 = arith.constant 0 : index
    %c0_1 = arith.constant 0 : index
    %c0_2 = arith.constant 0 : index
    %0 = vector.load %arg3[%c0, %c0_0, %c0_1, %c0_2] : memref<1x8x3x4xf32, #tpu.memory_space<vmem>>, vector<1x8x3x4xf32>
    %1 = vector.shape_cast %0 : vector<1x8x3x4xf32> to vector<8x3x4xf32>
    %2 = tpu.iota {dimensions = array<i32: 2>} : vector<1x1x4xi32>
    %c0_3 = arith.constant 0 : index
    %3 = memref.load %arg2[%c0_3] : memref<4xf32, #tpu.memory_space<smem>>
    %c1 = arith.constant 1 : index
    %4 = memref.load %arg2[%c1] : memref<4xf32, #tpu.memory_space<smem>>
    %c2 = arith.constant 2 : index
    %5 = memref.load %arg2[%c2] : memref<4xf32, #tpu.memory_space<smem>>
    %c3 = arith.constant 3 : index
    %6 = memref.load %arg2[%c3] : memref<4xf32, #tpu.memory_space<smem>>
    %cst = arith.constant 0.000000e+00 : f32
    %7 = vector.broadcast %cst : f32 to vector<1x1x4xf32>
    %c0_i32 = arith.constant 0 : i32
    %8 = vector.broadcast %c0_i32 : i32 to vector<1x1x4xi32>
    %9 = arith.cmpi eq, %2, %8 : vector<1x1x4xi32>
    %10 = vector.broadcast %3 : f32 to vector<1x1x4xf32>
    %11 = arith.select %9, %10, %7 : vector<1x1x4xi1>, vector<1x1x4xf32>
    %c1_i32 = arith.constant 1 : i32
    %12 = vector.broadcast %c1_i32 : i32 to vector<1x1x4xi32>
    %13 = arith.cmpi eq, %2, %12 : vector<1x1x4xi32>
    %14 = vector.broadcast %4 : f32 to vector<1x1x4xf32>
    %15 = arith.select %13, %14, %11 : vector<1x1x4xi1>, vector<1x1x4xf32>
    %c2_i32 = arith.constant 2 : i32
    %16 = vector.broadcast %c2_i32 : i32 to vector<1x1x4xi32>
    %17 = arith.cmpi eq, %2, %16 : vector<1x1x4xi32>
    %18 = vector.broadcast %5 : f32 to vector<1x1x4xf32>
    %19 = arith.select %17, %18, %15 : vector<1x1x4xi1>, vector<1x1x4xf32>
    %c3_i32 = arith.constant 3 : i32
    %20 = vector.broadcast %c3_i32 : i32 to vector<1x1x4xi32>
    %21 = arith.cmpi eq, %2, %20 : vector<1x1x4xi32>
    %22 = vector.broadcast %6 : f32 to vector<1x1x4xf32>
    %23 = arith.select %21, %22, %19 : vector<1x1x4xi1>, vector<1x1x4xf32>
    %24 = vector.shape_cast %23 : vector<1x1x4xf32> to vector<1x1x4xf32>
    %25 = vector.broadcast %24 : vector<1x1x4xf32> to vector<8x3x4xf32>
    %c0_4 = arith.constant 0 : index
    %26 = memref.load %arg1[%c0_4] : memref<16xf32, #tpu.memory_space<smem>>
    %c4 = arith.constant 4 : index
    %27 = memref.load %arg1[%c4] : memref<16xf32, #tpu.memory_space<smem>>
    %c8 = arith.constant 8 : index
    %28 = memref.load %arg1[%c8] : memref<16xf32, #tpu.memory_space<smem>>
    %c12 = arith.constant 12 : index
    %29 = memref.load %arg1[%c12] : memref<16xf32, #tpu.memory_space<smem>>
    %cst_5 = arith.constant 0.000000e+00 : f32
    %30 = vector.broadcast %cst_5 : f32 to vector<1x1x4xf32>
    %c0_i32_6 = arith.constant 0 : i32
    %31 = vector.broadcast %c0_i32_6 : i32 to vector<1x1x4xi32>
    %32 = arith.cmpi eq, %2, %31 : vector<1x1x4xi32>
    %33 = vector.broadcast %26 : f32 to vector<1x1x4xf32>
    %34 = arith.select %32, %33, %30 : vector<1x1x4xi1>, vector<1x1x4xf32>
    %c1_i32_7 = arith.constant 1 : i32
    %35 = vector.broadcast %c1_i32_7 : i32 to vector<1x1x4xi32>
    %36 = arith.cmpi eq, %2, %35 : vector<1x1x4xi32>
    %37 = vector.broadcast %27 : f32 to vector<1x1x4xf32>
    %38 = arith.select %36, %37, %34 : vector<1x1x4xi1>, vector<1x1x4xf32>
    %c2_i32_8 = arith.constant 2 : i32
    %39 = vector.broadcast %c2_i32_8 : i32 to vector<1x1x4xi32>
    %40 = arith.cmpi eq, %2, %39 : vector<1x1x4xi32>
    %41 = vector.broadcast %28 : f32 to vector<1x1x4xf32>
    %42 = arith.select %40, %41, %38 : vector<1x1x4xi1>, vector<1x1x4xf32>
    %c3_i32_9 = arith.constant 3 : i32
    %43 = vector.broadcast %c3_i32_9 : i32 to vector<1x1x4xi32>
    %44 = arith.cmpi eq, %2, %43 : vector<1x1x4xi32>
    %45 = vector.broadcast %29 : f32 to vector<1x1x4xf32>
    %46 = arith.select %44, %45, %42 : vector<1x1x4xi1>, vector<1x1x4xf32>
    %47 = vector.extract_strided_slice %1 {offsets = [0, 0, 0], sizes = [8, 3, 1], strides = [1, 1, 1]} : vector<8x3x4xf32> to vector<8x3x1xf32>
    %48 = vector.broadcast %47 : vector<8x3x1xf32> to vector<8x3x4xf32>
    %49 = vector.broadcast %46 : vector<1x1x4xf32> to vector<8x3x4xf32>
    %50 = arith.mulf %48, %49 : vector<8x3x4xf32>
    %51 = arith.addf %25, %50 : vector<8x3x4xf32>
    %c1_10 = arith.constant 1 : index
    %52 = memref.load %arg1[%c1_10] : memref<16xf32, #tpu.memory_space<smem>>
    %c5 = arith.constant 5 : index
    %53 = memref.load %arg1[%c5] : memref<16xf32, #tpu.memory_space<smem>>
    %c9 = arith.constant 9 : index
    %54 = memref.load %arg1[%c9] : memref<16xf32, #tpu.memory_space<smem>>
    %c13 = arith.constant 13 : index
    %55 = memref.load %arg1[%c13] : memref<16xf32, #tpu.memory_space<smem>>
    %cst_11 = arith.constant 0.000000e+00 : f32
    %56 = vector.broadcast %cst_11 : f32 to vector<1x1x4xf32>
    %c0_i32_12 = arith.constant 0 : i32
    %57 = vector.broadcast %c0_i32_12 : i32 to vector<1x1x4xi32>
    %58 = arith.cmpi eq, %2, %57 : vector<1x1x4xi32>
    %59 = vector.broadcast %52 : f32 to vector<1x1x4xf32>
    %60 = arith.select %58, %59, %56 : vector<1x1x4xi1>, vector<1x1x4xf32>
    %c1_i32_13 = arith.constant 1 : i32
    %61 = vector.broadcast %c1_i32_13 : i32 to vector<1x1x4xi32>
    %62 = arith.cmpi eq, %2, %61 : vector<1x1x4xi32>
    %63 = vector.broadcast %53 : f32 to vector<1x1x4xf32>
    %64 = arith.select %62, %63, %60 : vector<1x1x4xi1>, vector<1x1x4xf32>
    %c2_i32_14 = arith.constant 2 : i32
    %65 = vector.broadcast %c2_i32_14 : i32 to vector<1x1x4xi32>
    %66 = arith.cmpi eq, %2, %65 : vector<1x1x4xi32>
    %67 = vector.broadcast %54 : f32 to vector<1x1x4xf32>
    %68 = arith.select %66, %67, %64 : vector<1x1x4xi1>, vector<1x1x4xf32>
    %c3_i32_15 = arith.constant 3 : i32
    %69 = vector.broadcast %c3_i32_15 : i32 to vector<1x1x4xi32>
    %70 = arith.cmpi eq, %2, %69 : vector<1x1x4xi32>
    %71 = vector.broadcast %55 : f32 to vector<1x1x4xf32>
    %72 = arith.select %70, %71, %68 : vector<1x1x4xi1>, vector<1x1x4xf32>
    %73 = vector.extract_strided_slice %1 {offsets = [0, 0, 1], sizes = [8, 3, 1], strides = [1, 1, 1]} : vector<8x3x4xf32> to vector<8x3x1xf32>
    %74 = vector.broadcast %73 : vector<8x3x1xf32> to vector<8x3x4xf32>
    %75 = vector.broadcast %72 : vector<1x1x4xf32> to vector<8x3x4xf32>
    %76 = arith.mulf %74, %75 : vector<8x3x4xf32>
    %77 = arith.addf %51, %76 : vector<8x3x4xf32>
    %c2_16 = arith.constant 2 : index
    %78 = memref.load %arg1[%c2_16] : memref<16xf32, #tpu.memory_space<smem>>
    %c6 = arith.constant 6 : index
    %79 = memref.load %arg1[%c6] : memref<16xf32, #tpu.memory_space<smem>>
    %c10 = arith.constant 10 : index
    %80 = memref.load %arg1[%c10] : memref<16xf32, #tpu.memory_space<smem>>
    %c14 = arith.constant 14 : index
    %81 = memref.load %arg1[%c14] : memref<16xf32, #tpu.memory_space<smem>>
    %cst_17 = arith.constant 0.000000e+00 : f32
    %82 = vector.broadcast %cst_17 : f32 to vector<1x1x4xf32>
    %c0_i32_18 = arith.constant 0 : i32
    %83 = vector.broadcast %c0_i32_18 : i32 to vector<1x1x4xi32>
    %84 = arith.cmpi eq, %2, %83 : vector<1x1x4xi32>
    %85 = vector.broadcast %78 : f32 to vector<1x1x4xf32>
    %86 = arith.select %84, %85, %82 : vector<1x1x4xi1>, vector<1x1x4xf32>
    %c1_i32_19 = arith.constant 1 : i32
    %87 = vector.broadcast %c1_i32_19 : i32 to vector<1x1x4xi32>
    %88 = arith.cmpi eq, %2, %87 : vector<1x1x4xi32>
    %89 = vector.broadcast %79 : f32 to vector<1x1x4xf32>
    %90 = arith.select %88, %89, %86 : vector<1x1x4xi1>, vector<1x1x4xf32>
    %c2_i32_20 = arith.constant 2 : i32
    %91 = vector.broadcast %c2_i32_20 : i32 to vector<1x1x4xi32>
    %92 = arith.cmpi eq, %2, %91 : vector<1x1x4xi32>
    %93 = vector.broadcast %80 : f32 to vector<1x1x4xf32>
    %94 = arith.select %92, %93, %90 : vector<1x1x4xi1>, vector<1x1x4xf32>
    %c3_i32_21 = arith.constant 3 : i32
    %95 = vector.broadcast %c3_i32_21 : i32 to vector<1x1x4xi32>
    %96 = arith.cmpi eq, %2, %95 : vector<1x1x4xi32>
    %97 = vector.broadcast %81 : f32 to vector<1x1x4xf32>
    %98 = arith.select %96, %97, %94 : vector<1x1x4xi1>, vector<1x1x4xf32>
    %99 = vector.extract_strided_slice %1 {offsets = [0, 0, 2], sizes = [8, 3, 1], strides = [1, 1, 1]} : vector<8x3x4xf32> to vector<8x3x1xf32>
    %100 = vector.broadcast %99 : vector<8x3x1xf32> to vector<8x3x4xf32>
    %101 = vector.broadcast %98 : vector<1x1x4xf32> to vector<8x3x4xf32>
    %102 = arith.mulf %100, %101 : vector<8x3x4xf32>
    %103 = arith.addf %77, %102 : vector<8x3x4xf32>
    %c3_22 = arith.constant 3 : index
    %104 = memref.load %arg1[%c3_22] : memref<16xf32, #tpu.memory_space<smem>>
    %c7 = arith.constant 7 : index
    %105 = memref.load %arg1[%c7] : memref<16xf32, #tpu.memory_space<smem>>
    %c11 = arith.constant 11 : index
    %106 = memref.load %arg1[%c11] : memref<16xf32, #tpu.memory_space<smem>>
    %c15 = arith.constant 15 : index
    %107 = memref.load %arg1[%c15] : memref<16xf32, #tpu.memory_space<smem>>
    %cst_23 = arith.constant 0.000000e+00 : f32
    %108 = vector.broadcast %cst_23 : f32 to vector<1x1x4xf32>
    %c0_i32_24 = arith.constant 0 : i32
    %109 = vector.broadcast %c0_i32_24 : i32 to vector<1x1x4xi32>
    %110 = arith.cmpi eq, %2, %109 : vector<1x1x4xi32>
    %111 = vector.broadcast %104 : f32 to vector<1x1x4xf32>
    %112 = arith.select %110, %111, %108 : vector<1x1x4xi1>, vector<1x1x4xf32>
    %c1_i32_25 = arith.constant 1 : i32
    %113 = vector.broadcast %c1_i32_25 : i32 to vector<1x1x4xi32>
    %114 = arith.cmpi eq, %2, %113 : vector<1x1x4xi32>
    %115 = vector.broadcast %105 : f32 to vector<1x1x4xf32>
    %116 = arith.select %114, %115, %112 : vector<1x1x4xi1>, vector<1x1x4xf32>
    %c2_i32_26 = arith.constant 2 : i32
    %117 = vector.broadcast %c2_i32_26 : i32 to vector<1x1x4xi32>
    %118 = arith.cmpi eq, %2, %117 : vector<1x1x4xi32>
    %119 = vector.broadcast %106 : f32 to vector<1x1x4xf32>
    %120 = arith.select %118, %119, %116 : vector<1x1x4xi1>, vector<1x1x4xf32>
    %c3_i32_27 = arith.constant 3 : i32
    %121 = vector.broadcast %c3_i32_27 : i32 to vector<1x1x4xi32>
    %122 = arith.cmpi eq, %2, %121 : vector<1x1x4xi32>
    %123 = vector.broadcast %107 : f32 to vector<1x1x4xf32>
    %124 = arith.select %122, %123, %120 : vector<1x1x4xi1>, vector<1x1x4xf32>
    %125 = vector.extract_strided_slice %1 {offsets = [0, 0, 3], sizes = [8, 3, 1], strides = [1, 1, 1]} : vector<8x3x4xf32> to vector<8x3x1xf32>
    %126 = vector.broadcast %125 : vector<8x3x1xf32> to vector<8x3x4xf32>
    %127 = vector.broadcast %124 : vector<1x1x4xf32> to vector<8x3x4xf32>
    %128 = arith.mulf %126, %127 : vector<8x3x4xf32>
    %129 = arith.addf %103, %128 : vector<8x3x4xf32>
    %cst_28 = arith.constant dense<0.000000e+00> : vector<8x3xf32>
    %130 = vector.multi_reduction <add>, %129, %cst_28 [2] : vector<8x3x4xf32> to vector<8x3xf32>
    %131 = vector.shape_cast %130 : vector<8x3xf32> to vector<8x3x1xf32>
    %cst_29 = arith.constant dense<0.000000e+00> : vector<8x1xf32>
    %132 = vector.multi_reduction <add>, %131, %cst_29 [1] : vector<8x3x1xf32> to vector<8x1xf32>
    %133 = vector.shape_cast %132 : vector<8x1xf32> to vector<8x1x1xf32>
    %cst_30 = arith.constant 0.000000e+00 : f32
    %134 = vector.broadcast %cst_30 : f32 to vector<8x1x1xf32>
    %135 = arith.cmpf ogt, %133, %134 : vector<8x1x1xf32>
    %cst_31 = arith.constant 1.000000e+00 : f32
    %cst_32 = arith.constant -1.000000e+00 : f32
    %136 = vector.broadcast %cst_31 : f32 to vector<8x1x1xf32>
    %137 = vector.broadcast %cst_32 : f32 to vector<8x1x1xf32>
    %138 = arith.select %135, %136, %137 : vector<8x1x1xi1>, vector<8x1x1xf32>
    %139 = vector.broadcast %138 : vector<8x1x1xf32> to vector<8x3x4xf32>
    %140 = arith.mulf %129, %139 : vector<8x3x4xf32>
    %cst_33 = arith.constant 0.000000e+00 : f32
    %141 = vector.broadcast %cst_33 : f32 to vector<3x4xf32>
    %142 = vector.extract_strided_slice %140 {offsets = [0, 0, 0], sizes = [1, 3, 4], strides = [1, 1, 1]} : vector<8x3x4xf32> to vector<1x3x4xf32>
    %143 = vector.shape_cast %142 : vector<1x3x4xf32> to vector<3x4xf32>
    %144 = arith.addf %143, %141 : vector<3x4xf32>
    %145 = math.tanh %144 : vector<3x4xf32>
    %146 = vector.extract_strided_slice %140 {offsets = [1, 0, 0], sizes = [1, 3, 4], strides = [1, 1, 1]} : vector<8x3x4xf32> to vector<1x3x4xf32>
    %147 = vector.shape_cast %146 : vector<1x3x4xf32> to vector<3x4xf32>
    %148 = arith.addf %147, %145 : vector<3x4xf32>
    %149 = math.tanh %148 : vector<3x4xf32>
    %150 = vector.extract_strided_slice %140 {offsets = [2, 0, 0], sizes = [1, 3, 4], strides = [1, 1, 1]} : vector<8x3x4xf32> to vector<1x3x4xf32>
    %151 = vector.shape_cast %150 : vector<1x3x4xf32> to vector<3x4xf32>
    %152 = arith.addf %151, %149 : vector<3x4xf32>
    %153 = math.tanh %152 : vector<3x4xf32>
    %154 = vector.extract_strided_slice %140 {offsets = [3, 0, 0], sizes = [1, 3, 4], strides = [1, 1, 1]} : vector<8x3x4xf32> to vector<1x3x4xf32>
    %155 = vector.shape_cast %154 : vector<1x3x4xf32> to vector<3x4xf32>
    %156 = arith.addf %155, %153 : vector<3x4xf32>
    %157 = math.tanh %156 : vector<3x4xf32>
    %158 = vector.extract_strided_slice %140 {offsets = [4, 0, 0], sizes = [1, 3, 4], strides = [1, 1, 1]} : vector<8x3x4xf32> to vector<1x3x4xf32>
    %159 = vector.shape_cast %158 : vector<1x3x4xf32> to vector<3x4xf32>
    %160 = arith.addf %159, %157 : vector<3x4xf32>
    %161 = math.tanh %160 : vector<3x4xf32>
    %162 = vector.extract_strided_slice %140 {offsets = [5, 0, 0], sizes = [1, 3, 4], strides = [1, 1, 1]} : vector<8x3x4xf32> to vector<1x3x4xf32>
    %163 = vector.shape_cast %162 : vector<1x3x4xf32> to vector<3x4xf32>
    %164 = arith.addf %163, %161 : vector<3x4xf32>
    %165 = math.tanh %164 : vector<3x4xf32>
    %166 = vector.extract_strided_slice %140 {offsets = [6, 0, 0], sizes = [1, 3, 4], strides = [1, 1, 1]} : vector<8x3x4xf32> to vector<1x3x4xf32>
    %167 = vector.shape_cast %166 : vector<1x3x4xf32> to vector<3x4xf32>
    %168 = arith.addf %167, %165 : vector<3x4xf32>
    %169 = math.tanh %168 : vector<3x4xf32>
    %170 = vector.extract_strided_slice %140 {offsets = [7, 0, 0], sizes = [1, 3, 4], strides = [1, 1, 1]} : vector<8x3x4xf32> to vector<1x3x4xf32>
    %171 = vector.shape_cast %170 : vector<1x3x4xf32> to vector<3x4xf32>
    %172 = arith.addf %171, %169 : vector<3x4xf32>
    %173 = math.tanh %172 : vector<3x4xf32>
    %c0_34 = arith.constant 0 : index
    %c0_35 = arith.constant 0 : index
    %c0_36 = arith.constant 0 : index
    %174 = vector.load %arg4[%c0_34, %c0_35, %c0_36] : memref<1x3x4xf32, #tpu.memory_space<vmem>>, vector<1x3x4xf32>
    %175 = vector.shape_cast %174 : vector<1x3x4xf32> to vector<3x4xf32>
    %176 = vector.shape_cast %173 : vector<3x4xf32> to vector<1x3x4xf32>
    tpu.vector_store %arg4[%c0_34, %c0_35, %c0_36], %176 {strides = array<i32>} : memref<1x3x4xf32, #tpu.memory_space<vmem>>, vector<1x3x4xf32>,
    return
  }
  func.func @transform_0(%arg0: i32) -> i32 {
    %c0_i32 = arith.constant 0 : i32
    %c0_i32_0 = arith.constant 0 : i32
    return %c0_i32 : i32
  }
  func.func @transform_1(%arg0: i32) -> i32 {
    %c0_i32 = arith.constant 0 : i32
    %c0_i32_0 = arith.constant 0 : i32
    return %c0_i32 : i32
  }
  func.func @transform_2(%arg0: i32) -> (i32, i32, i32, i32) {
    %c0_i32 = arith.constant 0 : i32
    %c0_i32_0 = arith.constant 0 : i32
    %c0_i32_1 = arith.constant 0 : i32
    %c0_i32_2 = arith.constant 0 : i32
    return %arg0, %c0_i32, %c0_i32_0, %c0_i32_1 : i32, i32, i32, i32
  }
  func.func @transform_3(%arg0: i32) -> (i32, i32, i32) {
    %c0_i32 = arith.constant 0 : i32
    %c0_i32_0 = arith.constant 0 : i32
    %c0_i32_1 = arith.constant 0 : i32
    return %arg0, %c0_i32, %c0_i32_0 : i32, i32, i32
  }
}

</mosaic_0001>

<bundles_post_ra>
// kernel: tpu_custom_call.1
= control target key start
LH: loop header
LB: loop body
LE: loop exit
PB: predicated region body
PF: predicated region fallthrough
CT: control target
= control target key end

     0   :  { %8 = vsyncpa [#allocation3], 0  ;;  %s781_s0 = inlined_call_operand.vmem [shape: f32[16], index: 0, kind: input, shape index: {}]   ;;  %s782_s1 = inlined_call_operand.vmem [shape: f32[4], index: 1, kind: input, shape index: {}]   ;;  %s783_s2 = inlined_call_operand.vmem [shape: f32[1,8,3,4], index: 2, kind: input, shape index: {}]   ;;  %s784_s3 = inlined_call_operand.vmem [shape: f32[1,3,4], index: 3, kind: output, shape index: {}]  }
   0x1   :  { %s15_s14 = sshll.u32 %s781_s0, 4  ;;  %s16_s14 = int_to_ptr.vmem [resolvable:$true] %s15_s14 }
   0x2   :  { %9 = vsyncpa [#allocation5], 0  ;;  %s24_s17 = sshll.u32 %s782_s1, 4  ;;  %s529_s18 = smov [#allocation2]   ;;  %s25_s17 = int_to_ptr.vmem [resolvable:$true] %s24_s17 }
   0x3   :  { %18 = dma.vmem_to_smem %s16_s14, 16, %s529_s18, [#allocation3]  }
   0x4   :  { %s530_s19 = smov [#allocation4]  }
   0x5   :  { %27 = dma.vmem_to_smem %s25_s17, 16, %s530_s19, [#allocation5]  }
   0x6   :  { %525 = dma.done.wait [#allocation3], 16  }
   0x7   :  { %526 = vsyncadd [#allocation3], 4294967280 }
   0x8   :  { %527 = dma.done.wait [#allocation5], 16  }
   0x9   :  { %528 = vsyncadd [#allocation5], 4294967280 }
   0xa   :  { %38 = sfence }
   0xb   :  { %v43_v0 = vld [vmem:[%s783_s2 + $0x10] sm:$0x7]  ;;  %v41_v1 = vld [vmem:[%s783_s2 + $0x8] sm:$0x7]  ;;  %v531_v2 = vmov 0   ;;  %v532_v9 = vmov 1   ;;  %v47_v12 = vlaneseq }
   0xc   :  { %469 = vset.pattern.permute.xlu2 %v531_v2  ;;  %468 = vset.pattern.permute.xlu1 %v531_v2  ;;  %v39_v3 = vld [vmem:[%s783_s2] sm:$0x7]  ;;  %v44_v4 = vld [vmem:[%s783_s2 + $0x14] sm:$0x7]  ;;  %v42_v5 = vld [vmem:[%s783_s2 + $0xc] sm:$0x7] }
   0xd   :  { %467 = vset.pattern.permute.xlu0 %v531_v2  ;;  %99 = vperm.xlu2 %469, %v43_v0   ;;  %v40_v6 = vld [vmem:[%s783_s2 + $0x4] sm:$0x7]  ;;  %v583_v7 = vld [vmem:[%s783_s2 + $0x1c] sm:$0x7]  ;;  %v588_v8 = vld [vmem:[%s783_s2 + $0x18] sm:$0x7] }
   0xe   :  { %89 = vperm.xlu1 %468, %v41_v1   ;;  %79 = vperm.xlu0 %467, %v39_v3   ;;  %v533_v10 = vmov 3   ;;  %v534_v11 = vmov 2   ;;  %s65_s2 = sld [smem:[#allocation2]]  ;;  %v598_v13 = vand.u32 127, %v47_v12  ;;  %vm313_vm4 = vcmask 26624  }
   0xf   :  { %s49_s7 = sld [smem:[#allocation4]]  ;;  %vm338_vm5 = vcmask 1042432  }
  0x10   :  { %s445_s8 = sld [smem:[#allocation2 + $0x4]]  ;;  %vm53_vm0 = vcmp.eq.s32.totalorder %v598_v13, 0  ;;  %vm56_vm1 = vcmp.eq.s32.totalorder %v598_v13, 1  ;;  %vm59_vm2 = vcmp.eq.s32.totalorder %v598_v13, 2  ;;  %vm62_vm3 = vcmp.eq.s32.totalorder %v598_v13, 3 }
  0x11   :  { %s442_s9 = sld [smem:[#allocation4 + $0x1]] }
  0x12   :  { %s446_s10 = sld [smem:[#allocation2 + $0x8]] }
  0x13   :  { %s443_s11 = sld [smem:[#allocation4 + $0x2]] }
  0x14   :  { %v69_v14 = vstv %s65_s2  ;;  %s447_s12 = sld [smem:[#allocation2 + $0xc]] }
  0x15   :  { %104 = vperm.xlu2 %469, %v44_v4   ;;  %v54_v15 = vstv %s49_s7  ;;  %s444_s13 = sld [smem:[#allocation4 + $0x3]]  ;;  %v70_v16 = vsel %vm53_vm0, %v69_v14, 0.0 }
  0x16   :  { %94 = vperm.xlu1 %468, %v42_v5   ;;  %84 = vperm.xlu0 %467, %v40_v6   ;;  %v71_v17 = vstv %s445_s8  ;;  %v55_v18 = vsel %vm53_vm0, %v54_v15, 0.0  ;;  %s448_s14 = sld [smem:[#allocation2 + $0x1]] }
  0x17   :  { %v57_v19 = vstv %s442_s9  ;;  %v72_v20 = vsel %vm56_vm1, %v71_v17, %v70_v16  ;;  %s449_s15 = sld [smem:[#allocation2 + $0x5]] }
  0x18   :  { %v73_v21 = vstv %s446_s10  ;;  %v58_v22 = vsel %vm56_vm1, %v57_v19, %v55_v18  ;;  %s452_s16 = sld [smem:[#allocation2 + $0x2]] }
  0x19   :  { %v60_v23 = vstv %s443_s11  ;;  %v74_v24 = vsel %vm59_vm2, %v73_v21, %v72_v20  ;;  %s450_s17 = sld [smem:[#allocation2 + $0x9]] }
  0x1a   :  { %v75_v25 = vstv %s447_s12  ;;  %v61_v26 = vsel %vm59_vm2, %v60_v23, %v58_v22  ;;  %s456_s18 = sld [smem:[#allocation2 + $0x3]] }
  0x1b   :  { %v63_v27 = vstv %s444_s13  ;;  %v621_v28 = vsel %vm62_vm3, %v75_v25, %v74_v24  ;;  %s453_s19 = sld [smem:[#allocation2 + $0x6]] }
  0x1c   :  { %v626_v31 = vsel %vm62_vm3, %v63_v27, %v61_v26  ;;  %s636_s20 = sld [smem:[#allocation2 + $0xd]]  ;;  %v137_v37 = vstv %s448_s14 }
  0x1d   :  { %470 = vset.pattern.permute.xlu2 %v532_v9  ;;  %s457_s21 = sld [smem:[#allocation2 + $0x7]]  ;;  %v138_v41 = vsel %vm53_vm0, %v137_v37, 0.0  ;;  %v139_v42 = vstv %s449_s15 }
  0x1e   :  { %114 = vperm.xlu1 %468, %v583_v7   ;;  %109 = vperm.xlu0 %467, %v588_v8   ;;  %s454_s0 = sld [smem:[#allocation2 + $0xa]]  ;;  %v197_v44 = vstv %s452_s16  ;;  %v140_v45 = vsel %vm56_vm1, %v139_v42, %v138_v41 }
  0x1f   :  { %146 = vperm.xlu2 %470, %v39_v3   ;;  %s458_s22 = sld [smem:[#allocation2 + $0xb]]  ;;  %v141_v46 = vstv %s450_s17  ;;  %v198_v48 = vsel %vm53_vm0, %v197_v44, 0.0 }
  0x20   :  { %s455_s1 = sld [smem:[#allocation2 + $0xe]]  ;;  %v257_v47 = vstv %s456_s18  ;;  %v142_v53 = vsel %vm59_vm2, %v141_v46, %v140_v45 }
  0x21   :  { %s459_s23 = sld [smem:[#allocation2 + $0xf]]  ;;  %v199_v49 = vstv %s453_s19  ;;  %v258_v54 = vsel %vm53_vm0, %v257_v47, 0.0 }
  0x22   :  { %v143_v50 = vstv %s636_s20  ;;  %v200_v58 = vsel %vm56_vm1, %v199_v49, %v198_v48 }
  0x23   :  { %v259_v55 = vstv %s457_s21  ;;  %v664_v62 = vsel %vm62_vm3, %v143_v50, %v142_v53 }
  0x24   :  { %v201_v59 = vstv %s454_s0  ;;  %v260_v63 = vsel %vm56_vm1, %v259_v55, %v258_v54 }
  0x26   :  { %472 = vset.pattern.permute.xlu1 %v533_v10  ;;  %471 = vset.pattern.permute.xlu0 %v534_v11  ;;  %v203_v2 = vstv %s455_s1 }
  0x27   :  { %266 = vperm.xlu1 %472, %v39_v3   ;;  %150 = vperm.xlu2 %470, %v40_v6  }
  0x28   :  { %206 = vperm.xlu0 %471, %v39_v3  }
  0x2f   :  { %473 = vset.pattern.permute.xlu1 %v534_v11  ;;  %474 = vset.pattern.permute.xlu2 %v533_v10 }
  0x30   :  { %226 = vperm.xlu0 %471, %v44_v4   ;;  %210 = vperm.xlu1 %473, %v40_v6  }
  0x31   :  { %270 = vperm.xlu2 %474, %v40_v6   ;;  %v263_v6 = vstv %s459_s23 }
  0x38   :  { %230 = vperm.xlu0 %471, %v588_v8   ;;  %214 = vperm.xlu1 %473, %v41_v1  }
  0x39   :  { %274 = vperm.xlu2 %474, %v41_v1  }
  0x40   :  { %480 = vset.pattern.permute.xlu0 %v533_v10  ;;  %475 = vset.pattern.permute.xlu1 %v532_v9 }
  0x41   :  { %476 = vset.pattern.permute.xlu2 %v534_v11  ;;  %278 = vperm.xlu0 %480, %v42_v5  }
  0x42   :  { %158 = vperm.xlu1 %475, %v42_v5   ;;  %218 = vperm.xlu2 %476, %v42_v5  }
  0x49   :  { %290 = vperm.xlu0 %480, %v588_v8  }
  0x4a   :  { %162 = vperm.xlu1 %475, %v43_v0   ;;  %222 = vperm.xlu2 %476, %v43_v0  }
  0x51   :  { %481 = vset.pattern.permute.xlu0 %v532_v9 }
  0x52   :  { %477 = vset.pattern.permute.xlu1 %v533_v10  ;;  %478 = vset.pattern.permute.xlu2 %v532_v9 }
  0x53   :  { %154 = vperm.xlu0 %481, %v41_v1   ;;  %282 = vperm.xlu1 %477, %v43_v0   ;;  %v261_v0 = vstv %s458_s22  ;;  %v202_v1 = vsel %vm59_vm2, %v201_v59, %v200_v58 }
  0x54   :  { %166 = vperm.xlu2 %478, %v44_v4   ;;  %v262_v5 = vsel %vm59_vm2, %v261_v0, %v260_v63 }
  0x5b   :  { %174 = vperm.xlu0 %481, %v583_v7   ;;  %286 = vperm.xlu1 %477, %v44_v4  }
  0x5c   :  { %482 = vset.pattern.permute.xlu2 %v534_v11 }
  0x63   :  { %479 = vset.pattern.permute.xlu1 %v532_v9  ;;  %484 = vset.pattern.permute.xlu0 %v533_v10 }
  0x64   :  { %170 = vperm.xlu1 %479, %v588_v8   ;;  %v676_v8 = vsel %vm62_vm3, %v203_v2, %v202_v1 }
  0x67   :  { %v100_v29 = vpop.permute.xlu2 %99 }
  0x68   :  { %v121_v30 = vmul.f32 %v100_v29, %v621_v28 }
  0x6a   :  { %v629_v32 = vadd.f32 %v121_v30, %v626_v31 }
  0x6c   :  { %483 = vset.pattern.permute.xlu1 %v533_v10  ;;  %v680_v10 = vsel %vm62_vm3, %v263_v6, %v262_v5 }
  0x6f   :  { %v632_v33 = vpop.permute.xlu2 %104 }
  0x70   :  { %v122_v49 = vmul.f32 %v632_v33, %v621_v28 }
  0x79   :  { %v147_v36 = vpop.permute.xlu2 %146 }
  0x7a   :  { %v177_v3 = vmul.f32 %v147_v36, %v664_v62 }
  0x80   :  { %v634_v34 = vpop.permute.xlu1 %89  ;;  %v80_v35 = vpop.permute.xlu0 %79 }
  0x81   :  { %v151_v57 = vpop.permute.xlu2 %150  ;;  %v117_v60 = vmul.f32 %v80_v35, %v621_v28  ;;  %v119_v45 = vmul.f32 %v634_v34, %v621_v28 }
  0x82   :  { %v178_v19 = vmul.f32 %v151_v57, %v664_v62 }
  0x83   :  { %v125_v4 = vadd.f32 %v117_v60, %v626_v31  ;;  %v127_v50 = vadd.f32 %v119_v45, %v626_v31 }
  0x85   :  { %v185_v14 = vadd.f32 %v177_v3, %v125_v4 }
  0x88   :  { %v95_v38 = vpop.permute.xlu1 %94  ;;  %v85_v39 = vpop.permute.xlu0 %84 }
  0x89   :  { %v120_v40 = vmul.f32 %v95_v38, %v621_v28  ;;  %v118_v12 = vmul.f32 %v85_v39, %v621_v28 }
  0x8b   :  { %v642_v43 = vadd.f32 %v120_v40, %v626_v31  ;;  %v271_v16 = vpop.permute.xlu2 %270  ;;  %v126_v20 = vadd.f32 %v118_v12, %v626_v31 }
  0x8c   :  { %v298_v24 = vmul.f32 %v271_v16, %v680_v10 }
  0x8d   :  { %v186_v25 = vadd.f32 %v178_v19, %v126_v20 }
  0x90   :  { %v115_v51 = vpop.permute.xlu1 %114  ;;  %v649_v52 = vpop.permute.xlu0 %109 }
  0x91   :  { %v124_v56 = vmul.f32 %v115_v51, %v621_v28  ;;  %v123_v3 = vmul.f32 %v649_v52, %v621_v28 }
  0x93   :  { %v660_v61 = vadd.f32 %v124_v56, %v626_v31  ;;  %v275_v29 = vpop.permute.xlu2 %274  ;;  %v130_v56 = vadd.f32 %v122_v49, %v626_v31 }
  0x94   :  { %v299_v34 = vmul.f32 %v275_v29, %v680_v10 }
  0x99   :  { %v267_v9 = vpop.permute.xlu1 %266 }
  0x9a   :  { %v207_v11 = vpop.permute.xlu0 %206  ;;  %v297_v17 = vmul.f32 %v267_v9, %v680_v10 }
  0x9b   :  { %v237_v15 = vmul.f32 %v207_v11, %v676_v8  ;;  %v131_v11 = vadd.f32 %v123_v3, %v626_v31 }
  0x9c   :  { %v219_v38 = vpop.permute.xlu2 %218 }
  0x9d   :  { %v245_v18 = vadd.f32 %v237_v15, %v185_v14  ;;  %v240_v4 = vmul.f32 %v219_v38, %v676_v8 }
  0x9f   :  { %v687_v21 = vadd.f32 %v297_v17, %v245_v18 }
  0xa1   :  { %v314_v13 = vsel %vm313_vm4, %v687_v21, 0.0 }
  0xa2   :  { %315 = vadd.xlane.f32.xlu2 %v314_v13  ;;  %v211_v22 = vpop.permute.xlu1 %210  ;;  %v227_v23 = vpop.permute.xlu0 %226 }
  0xa3   :  { %v238_v26 = vmul.f32 %v211_v22, %v676_v8  ;;  %v242_v57 = vmul.f32 %v227_v23, %v676_v8 }
  0xa4   :  { %v223_v41 = vpop.permute.xlu2 %222 }
  0xa5   :  { %v246_v27 = vadd.f32 %v238_v26, %v186_v25  ;;  %v241_v20 = vmul.f32 %v223_v41, %v676_v8 }
  0xa7   :  { %v693_v30 = vadd.f32 %v298_v24, %v246_v27 }
  0xa9   :  { %v317_v35 = vsel %vm313_vm4, %v693_v30, 0.0 }
  0xaa   :  { %v215_v36 = vpop.permute.xlu1 %214  ;;  %318 = vadd.xlane.f32.xlu1 %v317_v35  ;;  %v231_v37 = vpop.permute.xlu0 %230 }
  0xab   :  { %v239_v53 = vmul.f32 %v215_v36, %v676_v8  ;;  %v243_v14 = vmul.f32 %v231_v37, %v676_v8 }
  0xae   :  { %v167_v46 = vpop.permute.xlu2 %166 }
  0xaf   :  { %v182_v54 = vmul.f32 %v167_v46, %v664_v62  ;;  %v535_v46 = vmov -1.0  }
  0xb1   :  { %v190_v58 = vadd.f32 %v182_v54, %v130_v56 }
  0xb3   :  { %v279_v39 = vpop.permute.xlu0 %278  ;;  %v250_v0 = vadd.f32 %v242_v57, %v190_v58 }
  0xb4   :  { %v159_v40 = vpop.permute.xlu1 %158  ;;  %v300_v28 = vmul.f32 %v279_v39, %v680_v10 }
  0xb5   :  { %v180_v1 = vmul.f32 %v159_v40, %v664_v62 }
  0xb7   :  { %v188_v5 = vadd.f32 %v180_v1, %v642_v43 }
  0xb9   :  { %v248_v52 = vadd.f32 %v240_v4, %v188_v5 }
  0xba   :  { %234 = vperm.xlu2 %482, %v583_v7  }
  0xbb   :  { %v291_v42 = vpop.permute.xlu0 %290  ;;  %v732_v19 = vadd.f32 %v300_v28, %v248_v52 }
  0xbc   :  { %v163_v44 = vpop.permute.xlu1 %162  ;;  %v303_v15 = vmul.f32 %v291_v42, %v680_v10 }
  0xbd   :  { %v181_v43 = vmul.f32 %v163_v44, %v664_v62  ;;  %v323_v22 = vsel %vm313_vm4, %v732_v19, 0.0 }
  0xbf   :  { %v189_v13 = vadd.f32 %v181_v43, %v629_v32 }
  0xc1   :  { %v249_v24 = vadd.f32 %v241_v20, %v189_v13 }
  0xc3   :  { %294 = vperm.xlu1 %483, %v583_v7  }
  0xc5   :  { %v155_v47 = vpop.permute.xlu0 %154  ;;  %v283_v48 = vpop.permute.xlu1 %282 }
  0xc6   :  { %v179_v51 = vmul.f32 %v155_v47, %v664_v62  ;;  %v301_v23 = vmul.f32 %v283_v48, %v680_v10 }
  0xc8   :  { %v187_v55 = vadd.f32 %v179_v51, %v127_v50  ;;  %v741_v25 = vadd.f32 %v301_v23, %v249_v24 }
  0xca   :  { %v247_v7 = vadd.f32 %v239_v53, %v187_v55  ;;  %v326_v26 = vsel %vm313_vm4, %v741_v25, 0.0 }
  0xcc   :  { %v710_v59 = vadd.f32 %v299_v34, %v247_v7 }
  0xcd   :  { %v287_v33 = vpop.permute.xlu1 %286  ;;  %v175_v54 = vpop.permute.xlu0 %174 }
  0xce   :  { %v302_v60 = vmul.f32 %v287_v33, %v680_v10  ;;  %v320_v63 = vsel %vm313_vm4, %v710_v59, 0.0  ;;  %v184_v57 = vmul.f32 %v175_v54, %v664_v62 }
  0xcf   :  { %321 = vadd.xlane.f32.xlu0 %v320_v63 }
  0xd0   :  { %v716_v2 = vadd.f32 %v302_v60, %v250_v0  ;;  %v192_v33 = vadd.f32 %v184_v57, %v660_v61 }
  0xd2   :  { %v329_v9 = vsel %vm313_vm4, %v716_v2, 0.0 }
  0xd6   :  { %v171_v6 = vpop.permute.xlu1 %170 }
  0xd7   :  { %v183_v12 = vmul.f32 %v171_v6, %v664_v62  ;;  %330 = vadd.xlane.f32.xlu0 %v329_v9 }
  0xd9   :  { %v191_v16 = vadd.f32 %v183_v12, %v131_v11 }
  0xdb   :  { %v251_v17 = vadd.f32 %v243_v14, %v191_v16 }
  0xdd   :  { %v729_v18 = vadd.f32 %v303_v15, %v251_v17 }
  0xdf   :  { %v332_v31 = vsel %vm313_vm4, %v729_v18, 0.0 }
  0xe0   :  { %333 = vadd.xlane.f32.xlu0 %v332_v31 }
  0xe3   :  { %324 = vadd.xlane.f32.xlu2 %v323_v22 }
  0xed   :  { %327 = vadd.xlane.f32.xlu1 %v326_v26 }
 0x115   :  { %v316_v27 = vpop.xlane.xlu2 %315 }
 0x116   :  { %v339_v29 = vsel %vm338_vm5, %v316_v27, 0.0 }
 0x117   :  { %v340_v35 = vrot.slane %v339_v29, 4 }
 0x119   :  { %v341_v36 = vadd.f32 %v340_v35, %v339_v29 }
 0x11b   :  { %v342_v32 = vrot.slane %v341_v36, 2 }
 0x11d   :  { %v343_v37 = vadd.f32 %v342_v32, %v341_v36  ;;  %v319_v38 = vpop.xlane.xlu1 %318  ;;  %v235_v34 = vpop.permute.xlu2 %234 }
 0x11e   :  { %v346_v39 = vsel %vm338_vm5, %v319_v38, 0.0  ;;  %v244_v58 = vmul.f32 %v235_v34, %v676_v8 }
 0x11f   :  { %v344_v40 = vrot.slane %v343_v37, 1  ;;  %v347_v41 = vrot.slane %v346_v39, 4 }
 0x120   :  { %v252_v60 = vadd.f32 %v244_v58, %v192_v33 }
 0x121   :  { %v345_v42 = vadd.f32 %v344_v40, %v343_v37  ;;  %v348_v44 = vadd.f32 %v347_v41, %v346_v39 }
 0x123   :  { %vm395_vm6 = vcmp.gt.f32.partialorder %v345_v42, 0.0  ;;  %v349_v45 = vrot.slane %v348_v44, 2 }
 0x124   :  { %v403_v47 = vsel %vm395_vm6, 1.0, %v535_v46 }
 0x125   :  { %v411_v48 = vmul.f32 %v403_v47, %v687_v21  ;;  %v350_v49 = vadd.f32 %v349_v45, %v348_v44 }
 0x127   :  { %v351_v50 = vrot.slane %v350_v49, 1  ;;  %485 = vtanh.f32 %v411_v48 }
 0x129   :  { %v352_v51 = vadd.f32 %v351_v50, %v350_v49 }
 0x12b   :  { %vm396_vm7 = vcmp.gt.f32.partialorder %v352_v51, 0.0 }
 0x12c   :  { %v404_v53 = vsel %vm396_vm7, 1.0, %v535_v46 }
 0x12d   :  { %v412_v55 = vmul.f32 %v404_v53, %v693_v30  ;;  %v486_v56 = vpop.eup %485 }
 0x12f   :  { %v421_v7 = vadd.f32 %v486_v56, %v412_v55 }
 0x131   :  { %487 = vtanh.f32 %v421_v7 }
 0x135   :  { %v295_v21 = vpop.permute.xlu1 %294 }
 0x136   :  { %v304_v63 = vmul.f32 %v295_v21, %v680_v10 }
 0x137   :  { %v488_v24 = vpop.eup %487 }
 0x138   :  { %v755_v0 = vadd.f32 %v304_v63, %v252_v60 }
 0x13a   :  { %v335_v1 = vsel %vm313_vm4, %v755_v0, 0.0 }
 0x13b   :  { %336 = vadd.xlane.f32.xlu2 %v335_v1 }
 0x142   :  { %v322_v30 = vpop.xlane.xlu0 %321 }
 0x143   :  { %v353_v3 = vsel %vm338_vm5, %v322_v30, 0.0 }
 0x144   :  { %v354_v4 = vrot.slane %v353_v3, 4 }
 0x146   :  { %v355_v5 = vadd.f32 %v354_v4, %v353_v3 }
 0x148   :  { %v356_v6 = vrot.slane %v355_v5, 2 }
 0x14a   :  { %v357_v9 = vadd.f32 %v356_v6, %v355_v5  ;;  %v331_v22 = vpop.xlane.xlu0 %330 }
 0x14b   :  { %v374_v27 = vsel %vm338_vm5, %v331_v22, 0.0 }
 0x14c   :  { %v358_v12 = vrot.slane %v357_v9, 1  ;;  %v375_v35 = vrot.slane %v374_v27, 4 }
 0x14e   :  { %v359_v16 = vadd.f32 %v358_v12, %v357_v9  ;;  %v376_v37 = vadd.f32 %v375_v35, %v374_v27 }
 0x150   :  { %vm397_vm8 = vcmp.gt.f32.partialorder %v359_v16, 0.0  ;;  %v377_v41 = vrot.slane %v376_v37, 2 }
 0x151   :  { %v405_v43 = vsel %vm397_vm8, 1.0, %v535_v46 }
 0x152   :  { %v413_v20 = vmul.f32 %v405_v43, %v710_v59  ;;  %v378_v45 = vadd.f32 %v377_v41, %v376_v37 }
 0x153   :  { %v334_v59 = vpop.xlane.xlu0 %333 }
 0x154   :  { %v423_v26 = vadd.f32 %v488_v24, %v413_v20  ;;  %v381_v44 = vsel %vm338_vm5, %v334_v59, 0.0  ;;  %v379_v50 = vrot.slane %v378_v45, 1 }
 0x155   :  { %v382_v48 = vrot.slane %v381_v44, 4 }
 0x156   :  { %v325_v62 = vpop.xlane.xlu2 %324  ;;  %489 = vtanh.f32 %v423_v26 }
 0x157   :  { %v360_v8 = vsel %vm338_vm5, %v325_v62, 0.0  ;;  %v383_v51 = vadd.f32 %v382_v48, %v381_v44 }
 0x158   :  { %v361_v61 = vrot.slane %v360_v8, 4 }
 0x159   :  { %v384_v55 = vrot.slane %v383_v51, 2 }
 0x15a   :  { %v362_v11 = vadd.f32 %v361_v61, %v360_v8 }
 0x15b   :  { %v385_v56 = vadd.f32 %v384_v55, %v383_v51 }
 0x15c   :  { %v363_v14 = vrot.slane %v362_v11, 2  ;;  %v490_v40 = vpop.eup %489 }
 0x15d   :  { %v386_v57 = vrot.slane %v385_v56, 1 }
 0x15e   :  { %v364_v52 = vadd.f32 %v363_v14, %v362_v11 }
 0x15f   :  { %v387_v21 = vadd.f32 %v386_v57, %v385_v56 }
 0x160   :  { %v328_v10 = vpop.xlane.xlu1 %327  ;;  %v365_v31 = vrot.slane %v364_v52, 1 }
 0x161   :  { %v367_v15 = vsel %vm338_vm5, %v328_v10, 0.0  ;;  %vm401_vm12 = vcmp.gt.f32.partialorder %v387_v21, 0.0 }
 0x162   :  { %v368_v28 = vrot.slane %v367_v15, 4  ;;  %v366_v23 = vadd.f32 %v365_v31, %v364_v52  ;;  %v409_v63 = vsel %vm401_vm12, 1.0, %v535_v46 }
 0x163   :  { %v417_v4 = vmul.f32 %v409_v63, %v729_v18 }
 0x164   :  { %v369_v17 = vadd.f32 %v368_v28, %v367_v15  ;;  %vm398_vm9 = vcmp.gt.f32.partialorder %v366_v23, 0.0 }
 0x165   :  { %v406_v36 = vsel %vm398_vm9, 1.0, %v535_v46 }
 0x166   :  { %v370_v13 = vrot.slane %v369_v17, 2  ;;  %v414_v38 = vmul.f32 %v406_v36, %v732_v19  ;;  %v380_v19 = vadd.f32 %v379_v50, %v378_v45 }
 0x168   :  { %v371_v29 = vadd.f32 %v370_v13, %v369_v17  ;;  %v425_v42 = vadd.f32 %v490_v40, %v414_v38  ;;  %vm400_vm11 = vcmp.gt.f32.partialorder %v380_v19, 0.0 }
 0x169   :  { %v408_v34 = vsel %vm400_vm11, 1.0, %v535_v46 }
 0x16a   :  { %v372_v32 = vrot.slane %v371_v29, 1  ;;  %491 = vtanh.f32 %v425_v42  ;;  %v416_v58 = vmul.f32 %v408_v34, %v716_v2 }
 0x16c   :  { %v373_v39 = vadd.f32 %v372_v32, %v371_v29 }
 0x16e   :  { %vm399_vm10 = vcmp.gt.f32.partialorder %v373_v39, 0.0 }
 0x16f   :  { %v407_v47 = vsel %vm399_vm10, 1.0, %v535_v46 }
 0x170   :  { %v415_v49 = vmul.f32 %v407_v47, %v741_v25  ;;  %v492_v53 = vpop.eup %491 }
 0x172   :  { %v427_v54 = vadd.f32 %v492_v53, %v415_v49 }
 0x174   :  { %493 = vtanh.f32 %v427_v54 }
 0x17a   :  { %v494_v7 = vpop.eup %493 }
 0x17b   :  { %v429_v33 = vadd.f32 %v494_v7, %v416_v58 }
 0x17d   :  { %495 = vtanh.f32 %v429_v33 }
 0x183   :  { %v496_v30 = vpop.eup %495 }
 0x184   :  { %v431_v62 = vadd.f32 %v496_v30, %v417_v4 }
 0x186   :  { %497 = vtanh.f32 %v431_v62 }
 0x18c   :  { %v498_v11 = vpop.eup %497 }
 0x1ae   :  { %v337_v25 = vpop.xlane.xlu2 %336 }
 0x1af   :  { %v388_v60 = vsel %vm338_vm5, %v337_v25, 0.0 }
 0x1b0   :  { %v389_v1 = vrot.slane %v388_v60, 4 }
 0x1b2   :  { %v390_v3 = vadd.f32 %v389_v1, %v388_v60 }
 0x1b4   :  { %v391_v5 = vrot.slane %v390_v3, 2 }
 0x1b6   :  { %v392_v6 = vadd.f32 %v391_v5, %v390_v3 }
 0x1b8   :  { %v393_v8 = vrot.slane %v392_v6, 1 }
 0x1ba   :  { %v394_v2 = vadd.f32 %v393_v8, %v392_v6 }
 0x1bc   :  { %vm402_vm13 = vcmp.gt.f32.partialorder %v394_v2, 0.0 }
 0x1bd   :  { %v410_v61 = vsel %vm402_vm13, 1.0, %v535_v46 }
 0x1be   :  { %v418_v9 = vmul.f32 %v410_v61, %v755_v0 }
 0x1c0   :  { %v433_v12 = vadd.f32 %v498_v11, %v418_v9 }
 0x1c2   :  { %499 = vtanh.f32 %v433_v12 }
 0x1c8   :  { %v500_v10 = vpop.eup %499 }
 0x1c9   :  { %435 = vst.msk [vmem:[%s784_s3] sm:$0x7] %vm313_vm4, %v500_v10 }
 0x1ca   :  { %440 = vsyncpa [#allocation3], 1 }
 0x1cb   :  { %441 = vsyncpa [#allocation5], 1 }

</bundles_post_ra>
